<compile_context>
chip_gen: v7x
topology: tpu7x:2x2x1
jax: 0.10.0
libtpu: 0.0.40
codegen_flags: <defaults>
</compile_context>

<pallas_src>
import functools
import math

import jax
import jax.numpy as jnp
from jax import lax
from jax.experimental import pallas as pl
from jax.experimental.pallas import tpu as pltpu

NEG_INF = -1e30


def _tpu_vmem_capacity():
    try:
        return int(pltpu.get_tpu_info().vmem_capacity_bytes)
    except Exception:
        # Conservative default if the query is unavailable.
        return 64 * 1024 * 1024


_VMEM_CAP = _tpu_vmem_capacity()
_BIG_VMEM = _VMEM_CAP >= 100 * 1024 * 1024       # v5e/v6e: 128 MiB; v7x: 64 MiB
_VMEM_LIMIT = (96 if _BIG_VMEM else 40) * 1024 * 1024
_ROW_TILE = 512 if _BIG_VMEM else 256            # sublane (row) tiles
_COL_TILE = 1024 if _BIG_VMEM else 512           # lane (output-column) tiles


def _pick_tile(n, preferred, align):
    """Use `preferred` (a multiple of `align`) if it evenly divides n, else n."""
    if n <= preferred or n % preferred != 0:
        return n
    assert preferred % align == 0
    return preferred


def _pick_qkv_col_tile(C, hh, hd, preferred):
    """Column tile for the fused QKV output: must divide C, keep every tile
    wholly inside the Q|K or V section (2*hh tile-aligned) and be head-aligned."""
    for cand in (preferred, 512, 256, 128):
        if cand <= C and C % cand == 0 and (2 * hh) % cand == 0 and cand % hd == 0:
            return cand
    return hh


@functools.lru_cache(maxsize=None)
def _roll_is_numpy_convention():
    """Probe pltpu.roll's rotation direction once so the RoPE pair-swap is
    robust to either convention (np.roll style: out[j] = x[j-1] for shift=+1)."""
    def kern(x_ref, o_ref):
        o_ref[...] = pltpu.roll(x_ref[...], shift=1, axis=1)

    x = jnp.tile(jnp.arange(128, dtype=jnp.float32)[None, :], (8, 1))
    y = pl.pallas_call(
        kern, out_shape=jax.ShapeDtypeStruct((8, 128), jnp.float32))(x)
    return bool(y[0, 1] == 0.0)


# ------------------ kernel 1: RMSNorm + fused QKV + RoPE -------------------

def _rmsnorm_qkv_rope_kernel(x_ref, lnw_ref, w_ref, cos_ref, sin_ref, o_ref,
                             h_ref, *, eps, hd, hh, tc, np_roll):
    c = pl.program_id(1)

    # RMSNorm prologue: computed once per row tile (c == 0), reused for every
    # qkv column tile.  LN weight applied in f32, THEN cast so the MXU sees the
    # model dtype.
    @pl.when(c == 0)
    def _():
        xf = x_ref[...].astype(jnp.float32)
        n = xf * jax.lax.rsqrt(jnp.mean(xf * xf, axis=-1, keepdims=True) + eps)
        h_ref[...] = (n * lnw_ref[...].astype(jnp.float32)).astype(h_ref.dtype)

    y = jnp.dot(h_ref[...], w_ref[...],
                preferred_element_type=jnp.float32)          # [tr, tc]

    # This tile lies entirely in the Q|K section (< 2*hh) or the V section.
    is_qk = c * tc < 2 * hh

    @pl.when(is_qk)
    def _():
        # Interleaved-pair RoPE: out[2i]   = y[2i]*cos[i]   - y[2i+1]*sin[i]
        #                        out[2i+1] = y[2i+1]*cos[i] + y[2i]*sin[i]
        # Compact [tr, hd] tables are tiled across the heads in this tile.
        cos = jnp.tile(cos_ref[...], (1, tc // hd))          # [tr, tc]
        sin = jnp.tile(sin_ref[...], (1, tc // hd))
        r_prev = pltpu.roll(y, shift=1, axis=1)              # np conv: y[j-1]
        r_next = pltpu.roll(y, shift=tc - 1, axis=1)         # np conv: y[j+1]
        if not np_roll:
            r_prev, r_next = r_next, r_prev
        lane = jax.lax.broadcasted_iota(jnp.int32, y.shape, 1)
        swapped = jnp.where(lane % 2 == 0, r_next, r_prev)   # y[j ^ 1]
        o_ref[...] = (y * cos + swapped * sin).astype(o_ref.dtype)

    @pl.when(jnp.logical_not(is_qk))
    def _():
        o_ref[...] = y.astype(o_ref.dtype)


def fused_rmsnorm_qkv_rope(x2d, ln_w, w_qkv, cos_r, sin_r, eps, *, hd, hh):
    # TODO(synk): at very large D also chunk the contraction axis with a VMEM
    # accumulator; kept whole here since the RMSNorm prologue needs the full row.
    N, D = x2d.shape
    C = w_qkv.shape[1]
    tr = _pick_tile(N, _ROW_TILE, 8)
    tc = _pick_qkv_col_tile(C, hh, hd, _COL_TILE)
    kern = functools.partial(_rmsnorm_qkv_rope_kernel, eps=eps, hd=hd, hh=hh,
                             tc=tc, np_roll=_roll_is_numpy_convention())
    return pl.pallas_call(
        kern,
        out_shape=jax.ShapeDtypeStruct((N, C), x2d.dtype),
        grid=(N // tr, C // tc),
        in_specs=[
            pl.BlockSpec((tr, D), lambda r, c: (r, 0)),
            pl.BlockSpec((1, D), lambda r, c: (0, 0)),
            pl.BlockSpec((D, tc), lambda r, c: (0, c)),
            pl.BlockSpec((tr, hd), lambda r, c: (r, 0)),
            pl.BlockSpec((tr, hd), lambda r, c: (r, 0)),
        ],
        out_specs=pl.BlockSpec((tr, tc), lambda r, c: (r, c)),
        scratch_shapes=[pltpu.VMEM((tr, D), x2d.dtype)],
        compiler_params=pltpu.CompilerParams(
            dimension_semantics=("parallel", "arbitrary"),
            vmem_limit_bytes=_VMEM_LIMIT),
    )(x2d, ln_w, w_qkv, cos_r, sin_r)


# ---- kernel 2: attention over the HBM KV cache (flash-style KV streaming) ----

def _attention_kernel(sp_ref, q_ref, k_ref, v_ref, ck_hbm, cv_hbm,
                      o_ref, ck_out, cv_out,
                      kbuf, vbuf, rsem, wsem, *, blk, scale):
    b = pl.program_id(0)
    start_pos = sp_ref[0]
    H, S, hd = q_ref.shape[1], q_ref.shape[2], q_ref.shape[3]

    # 1) Write only the new [start_pos, start_pos + S) K/V slice back to the
    #    (aliased) HBM cache; everything else is preserved by aliasing.
    kw = pltpu.make_async_copy(
        k_ref.at[0], ck_out.at[b, :, pl.ds(start_pos, S), :], wsem.at[0])
    vw = pltpu.make_async_copy(
        v_ref.at[0], cv_out.at[b, :, pl.ds(start_pos, S), :], wsem.at[1])
    kw.start()
    vw.start()

    q = q_ref[0]            # [H, S, hd]   (model dtype -> MXU)
    kn = k_ref[0]
    vn = v_ref[0]

    # 2) Online-softmax init with the new block (causal mask inside it),
    #    overlapped with the cache-write DMAs.
    s = jnp.einsum("hqd,hkd->hqk", q, kn,
                   preferred_element_type=jnp.float32) * scale
    qi = jax.lax.broadcasted_iota(jnp.int32, (1, S, S), 1)
    kj = jax.lax.broadcasted_iota(jnp.int32, (1, S, S), 2)
    s = jnp.where(kj <= qi, s, NEG_INF)
    m = jnp.max(s, axis=-1, keepdims=True)
    p = jnp.exp(s - m)
    l = jnp.sum(p, axis=-1, keepdims=True)
    acc = jnp.einsum("hqk,hkd->hqd", p.astype(vn.dtype), vn,
                     preferred_element_type=jnp.float32)

    # 3) Make sure the new K/V landed (a partial prefix block may overlap it).
    kw.wait()
    vw.wait()

    # 4) Stream the cached prefix [0, start_pos) in double-buffered KV blocks.
    n_pref = (start_pos + blk - 1) // blk

    def fetch(j, slot):
        pltpu.make_async_copy(ck_hbm.at[b, :, pl.ds(j * blk, blk), :],
                              kbuf.at[slot], rsem.at[0, slot]).start()
        pltpu.make_async_copy(cv_hbm.at[b, :, pl.ds(j * blk, blk), :],
                              vbuf.at[slot], rsem.at[1, slot]).start()

    @pl.when(n_pref > 0)
    def _():
        fetch(0, 0)

    def body(j, carry):
        m, l, acc = carry
        slot = j & 1
        pltpu.make_async_copy(ck_hbm.at[b, :, pl.ds(0, blk), :],
                              kbuf.at[slot], rsem.at[0, slot]).wait()
        pltpu.make_async_copy(cv_hbm.at[b, :, pl.ds(0, blk), :],
                              vbuf.at[slot], rsem.at[1, slot]).wait()

        @pl.when(j + 1 < n_pref)
        def _():
            fetch(j + 1, 1 - slot)

        kc = kbuf[slot]
        vc = vbuf[slot]
        s = jnp.einsum("hqd,hkd->hqk", q, kc,
                       preferred_element_type=jnp.float32) * scale
        kpos = j * blk + jax.lax.broadcasted_iota(jnp.int32, (1, 1, blk), 2)
        # Drop the (possibly garbage / already-new) tail of a partial block.
        s = jnp.where(kpos < start_pos, s, NEG_INF)
        m_new = jnp.maximum(m, jnp.max(s, axis=-1, keepdims=True))
        a = jnp.exp(m - m_new)
        p = jnp.exp(s - m_new)
        l = a * l + jnp.sum(p, axis=-1, keepdims=True)
        acc = a * acc + jnp.einsum("hqk,hkd->hqd", p.astype(vc.dtype), vc,
                                   preferred_element_type=jnp.float32)
        return m_new, l, acc

    m, l, acc = lax.fori_loop(0, n_pref, body, (m, l, acc))

    # EUP reciprocal folded into the output scaling; emit a lane-dense
    # [S, H*hd] tile (heads concatenated along lanes).
    o = acc * pl.reciprocal(l, approx=True)                   # [H, S, hd] f32
    o_ref[0] = jnp.concatenate([o[h] for h in range(H)],
                               axis=-1).astype(o_ref.dtype)


def attention_with_cache(q, k_new, v_new, cache_k, cache_v, start_pos, *,
                         kv_block=256):
    # TODO(synk): add a head-axis grid dimension so v7x's two TensorCores stay
    # busy even at B == 1 decode.
    B, H, S, hd = q.shape
    Tmax = cache_k.shape[2]
    HH = H * hd
    blk = min(kv_block, Tmax)
    assert Tmax % blk == 0, (Tmax, blk)
    sp = jnp.full((1,), start_pos, dtype=jnp.int32)
    kern = functools.partial(_attention_kernel, blk=blk,
                             scale=1.0 / math.sqrt(hd))
    grid_spec = pltpu.PrefetchScalarGridSpec(
        num_scalar_prefetch=1,
        grid=(B,),
        in_specs=[
            pl.BlockSpec((1, H, S, hd), lambda b, sp: (b, 0, 0, 0)),
            pl.BlockSpec((1, H, S, hd), lambda b, sp: (b, 0, 0, 0)),
            pl.BlockSpec((1, H, S, hd), lambda b, sp: (b, 0, 0, 0)),
            pl.BlockSpec(memory_space=pl.ANY),     # cache_k stays in HBM
            pl.BlockSpec(memory_space=pl.ANY),     # cache_v stays in HBM
        ],
        out_specs=(
            pl.BlockSpec((1, S, HH), lambda b, sp: (b, 0, 0)),
            pl.BlockSpec(memory_space=pl.ANY),
            pl.BlockSpec(memory_space=pl.ANY),
        ),
        scratch_shapes=[
            pltpu.VMEM((2, H, blk, hd), cache_k.dtype),
            pltpu.VMEM((2, H, blk, hd), cache_v.dtype),
            pltpu.SemaphoreType.DMA((2, 2)),
            pltpu.SemaphoreType.DMA((2,)),
        ],
    )
    # input indices count the scalar-prefetch arg: (sp, q, k, v, ck, cv).
    return pl.pallas_call(
        kern,
        out_shape=(jax.ShapeDtypeStruct((B, S, HH), q.dtype),
                   jax.ShapeDtypeStruct(cache_k.shape, cache_k.dtype),
                   jax.ShapeDtypeStruct(cache_v.shape, cache_v.dtype)),
        grid_spec=grid_spec,
        input_output_aliases={4: 1, 5: 2},
        compiler_params=pltpu.CompilerParams(
            dimension_semantics=("parallel",),
            vmem_limit_bytes=_VMEM_LIMIT),
    )(sp, q, k_new, v_new, cache_k, cache_v)


# ---------------- kernel 3: Wo projection + fused residual ------------------

def _wo_residual_kernel(a_ref, w_ref, r_ref, o_ref):
    y = jnp.dot(a_ref[...], w_ref[...], preferred_element_type=jnp.float32)
    o_ref[...] = (r_ref[...].astype(jnp.float32) + y).astype(o_ref.dtype)


def wo_residual(attn2d, w_o, resid2d):
    # TODO(synk): at Llama scale also chunk the HH contraction ("arbitrary"
    # axis + f32 accumulator) so the Wo block never exceeds the VMEM budget.
    N, HH = attn2d.shape
    D = w_o.shape[1]
    tr = _pick_tile(N, _ROW_TILE, 8)
    td = _pick_tile(D, _COL_TILE, 128)
    return pl.pallas_call(
        _wo_residual_kernel,
        out_shape=jax.ShapeDtypeStruct((N, D), resid2d.dtype),
        grid=(N // tr, D // td),
        in_specs=[
            pl.BlockSpec((tr, HH), lambda r, d: (r, 0)),
            pl.BlockSpec((HH, td), lambda r, d: (0, d)),
            pl.BlockSpec((tr, td), lambda r, d: (r, d)),
        ],
        out_specs=pl.BlockSpec((tr, td), lambda r, d: (r, d)),
        compiler_params=pltpu.CompilerParams(
            dimension_semantics=("parallel", "parallel"),
            vmem_limit_bytes=_VMEM_LIMIT),
    )(attn2d, w_o, resid2d)


# -------------- kernel 4: RMSNorm + SwiGLU FFN + fused residual -------------

def _ffn_kernel(x_ref, lnw_ref, wgu_ref, wd_ref, o_ref, h_ref, acc_ref,
                *, eps, tf):
    # First hidden chunk: compute RMSNorm(x) once, zero the f32 accumulator.
    @pl.when(pl.program_id(1) == 0)
    def _():
        xf = x_ref[...].astype(jnp.float32)
        n = xf * jax.lax.rsqrt(jnp.mean(xf * xf, axis=-1, keepdims=True) + eps)
        h_ref[...] = (n * lnw_ref[...].astype(jnp.float32)).astype(h_ref.dtype)
        acc_ref[...] = jnp.zeros_like(acc_ref)

    h = h_ref[...]
    # One fused [gate | up] dot per hidden chunk.
    gu = jnp.dot(h, wgu_ref[...], preferred_element_type=jnp.float32)  # [tr,2tf]
    g = gu[:, :tf]
    u = gu[:, tf:]
    a = (g * jax.nn.sigmoid(g)) * u                                    # SiLU*up
    acc_ref[...] += jnp.dot(a.astype(h.dtype), wd_ref[...],
                            preferred_element_type=jnp.float32)

    # Last chunk: add the residual and emit a lane-dense [tr, D] tile.
    @pl.when(pl.program_id(1) == pl.num_programs(1) - 1)
    def _():
        o_ref[...] = (x_ref[...].astype(jnp.float32)
                      + acc_ref[...]).astype(o_ref.dtype)


def ffn_residual(x2d, ln_w, w_gate, w_up, w_down, eps):
    N, D = x2d.shape
    F = w_gate.shape[1]
    tr = _pick_tile(N, _ROW_TILE, 8)
    tf = _pick_tile(F, 512, 128)
    nch = F // tf
    # TODO(synk): pre-pack this chunk-interleaved [gate | up] weight offline.
    w_gu = jnp.concatenate(
        [w_gate.reshape(D, nch, tf), w_up.reshape(D, nch, tf)],
        axis=2).reshape(D, 2 * F)
    return pl.pallas_call(
        functools.partial(_ffn_kernel, eps=eps, tf=tf),
        out_shape=jax.ShapeDtypeStruct((N, D), x2d.dtype),
        grid=(N // tr, nch),
        in_specs=[
            pl.BlockSpec((tr, D), lambda r, f: (r, 0)),
            pl.BlockSpec((1, D), lambda r, f: (0, 0)),
            pl.BlockSpec((D, 2 * tf), lambda r, f: (0, f)),
            pl.BlockSpec((tf, D), lambda r, f: (f, 0)),
        ],
        out_specs=pl.BlockSpec((tr, D), lambda r, f: (r, 0)),
        scratch_shapes=[pltpu.VMEM((tr, D), x2d.dtype),
                        pltpu.VMEM((tr, D), jnp.float32)],
        compiler_params=pltpu.CompilerParams(
            dimension_semantics=("parallel", "arbitrary"),
            vmem_limit_bytes=_VMEM_LIMIT),
    )(x2d, ln_w, w_gu, w_down)


# ------------------------------ Block wrapper -------------------------------

def block_forward(params, x, start_pos, cos, sin, cache_k, cache_v, eps,
                  kv_block=256):
    """x: [B,S,D]; cos/sin: [S, hd//2]; cache_*: head-major [max_B,H,Tmax,hd].
    The PyTorch Attention keeps its cache as a persistent buffer; here it is
    threaded functionally and updated in-place via aliased kernel outputs."""
    B, S, D = x.shape
    H, hd = params["n_heads"], params["head_dim"]
    HH = H * hd

    # Compact per-token RoPE lane tables [B*S, hd] (interleaved-pair layout).
    cos_h = jnp.repeat(cos, 2, axis=-1)                               # [S, hd]
    sin_h = jnp.stack([-sin, sin], axis=-1).reshape(S, hd)            # [S, hd]
    cos_r = jnp.tile(cos_h, (B, 1))                                   # [B*S, hd]
    sin_r = jnp.tile(sin_h, (B, 1))

    x2d = x.reshape(B * S, D)

    # Fused RMSNorm + QKV + RoPE: one pass over the activations.
    qkv = fused_rmsnorm_qkv_rope(x2d, params["input_ln_w"], params["w_qkv"],
                                 cos_r, sin_r, eps, hd=hd, hh=HH)     # [N, 3HH]

    # Small new-token transposes into the cache's head-major layout.
    qkv = qkv.reshape(B, S, 3, H, hd)
    q = jnp.transpose(qkv[:, :, 0], (0, 2, 1, 3))                     # [B,H,S,hd]
    k_new = jnp.transpose(qkv[:, :, 1], (0, 2, 1, 3))
    v_new = jnp.transpose(qkv[:, :, 2], (0, 2, 1, 3))

    attn, cache_k, cache_v = attention_with_cache(
        q, k_new, v_new, cache_k, cache_v, start_pos,
        kv_block=kv_block)                                            # [B,S,HH]

    # Output projection with fused residual add (attn is already lane-dense).
    h1 = wo_residual(attn.reshape(B * S, HH), params["w_o"], x2d)     # [N, D]

    # RMSNorm + SwiGLU MLP with fused residual add.
    out = ffn_residual(h1, params["post_ln_w"], params["w_gate"],
                       params["w_up"], params["w_down"], eps)
    return out.reshape(B, S, D), cache_k, cache_v


# --------------------------- pure-JAX reference -----------------------------

def reference_block(params, x, start_pos, cos, sin, cache_k, cache_v, eps):
    B, S, D = x.shape
    H, hd = params["n_heads"], params["head_dim"]
    HH = H * hd

    def rms(t, w):
        tf = t.astype(jnp.float32)
        n = tf * jax.lax.rsqrt(jnp.mean(tf * tf, -1, keepdims=True) + eps)
        return n.astype(t.dtype) * w

    def rope(t):                                                      # [B,S,H,hd]
        tp = t.reshape(B, S, H, hd // 2, 2)
        e, o = tp[..., 0], tp[..., 1]
        c, s = cos[None, :, None, :], sin[None, :, None, :]
        return jnp.stack([e * c - o * s, o * c + e * s], -1).reshape(B, S, H, hd)

    h = rms(x, params["input_ln_w"])
    qkv = (h.reshape(B * S, D) @ params["w_qkv"]).reshape(B, S, 3 * HH)
    q = rope(qkv[..., :HH].reshape(B, S, H, hd))
    k = rope(qkv[..., HH:2 * HH].reshape(B, S, H, hd))
    v = qkv[..., 2 * HH:].reshape(B, S, H, hd)

    kh = jnp.transpose(k, (0, 2, 1, 3))                               # [B,H,S,hd]
    vh = jnp.transpose(v, (0, 2, 1, 3))
    cache_k = cache_k.at[:B, :, start_pos:start_pos + S, :].set(kh)
    cache_v = cache_v.at[:B, :, start_pos:start_pos + S, :].set(vh)

    T = start_pos + S
    keys = cache_k[:B, :, :T]
    values = cache_v[:B, :, :T]
    qh = jnp.transpose(q, (0, 2, 1, 3))
    scores = jnp.einsum("bhqd,bhkd->bhqk", qh, keys) / math.sqrt(hd)
    causal = jnp.where(
        jnp.arange(T)[None, :] <= (start_pos + jnp.arange(S))[:, None],
        0.0, NEG_INF)
    p = jax.nn.softmax(scores + causal[None, None], axis=-1)
    o = jnp.einsum("bhqk,bhkd->bhqd", p, values)
    o2d = jnp.transpose(o, (0, 2, 1, 3)).reshape(B * S, HH)
    x = x + (o2d @ params["w_o"]).reshape(B, S, D)

    h2 = rms(x, params["post_ln_w"]).reshape(B * S, D)
    m = (jax.nn.silu(h2 @ params["w_gate"]) * (h2 @ params["w_up"])) \
        @ params["w_down"]
    return x + m.reshape(B, S, D), cache_k, cache_v


# ---------------------------------- main ------------------------------------

if __name__ == "__main__":
    # Small but TPU-friendly dims (lane-dense: D, H*hd, hidden all % 128 == 0).
    dim, n_heads, head_dim, hidden_dim = 128, 4, 32, 256
    max_batch_size, max_seq_len = 2, 32
    norm_eps = 1e-6
    B, S = 2, 8
    H, hd, HH = n_heads, head_dim, n_heads * head_dim

    key = jax.random.PRNGKey(0)
    ks = jax.random.split(key, 12)
    wscale = 0.05

    def linear_w(k, out_f, in_f):
        # nn.Linear weight is [out, in]; store the transposed [in, out] copy.
        return (wscale * jax.random.normal(k, (out_f, in_f), jnp.float32)).T

    wq = linear_w(ks[0], HH, dim)
    wk = linear_w(ks[1], HH, dim)
    wv = linear_w(ks[2], HH, dim)

    params = {
        "n_heads": n_heads,
        "head_dim": head_dim,
        "input_ln_w": jnp.ones((1, dim), jnp.float32),
        "post_ln_w": jnp.ones((1, dim), jnp.float32),
        "w_qkv": jnp.concatenate([wq, wk, wv], axis=1),   # [D, 3*H*hd]
        "w_o": linear_w(ks[3], dim, HH),
        "w_gate": linear_w(ks[4], hidden_dim, dim),
        "w_up": linear_w(ks[5], hidden_dim, dim),
        "w_down": linear_w(ks[6], dim, hidden_dim),
    }

    inv_freq = 1.0 / (10000.0 ** (jnp.arange(0, hd, 2, dtype=jnp.float32) / hd))

    # Head-major KV caches: one pair threaded through the kernels, one through
    # the pure-JAX reference.
    cache_k = jnp.zeros((max_batch_size, H, max_seq_len, hd), jnp.float32)
    cache_v = jnp.zeros_like(cache_k)
    ref_ck, ref_cv = cache_k, cache_v

    # Prefill + two "decode" chunks: exercises 0, 1 and 2 cached-prefix blocks.
    for step, start_pos in enumerate((0, 8, 16)):
        x = jax.random.normal(ks[7 + step], (B, S, dim), jnp.float32)
        pos = jnp.arange(start_pos, start_pos + S, dtype=jnp.float32)
        angles = pos[:, None] * inv_freq[None, :]                     # [S, hd//2]
        cos, sin = jnp.cos(angles), jnp.sin(angles)

        ref, ref_ck, ref_cv = reference_block(
            params, x, start_pos, cos, sin, ref_ck, ref_cv, norm_eps)

        out, cache_k, cache_v = block_forward(
            params, x, start_pos, cos, sin, cache_k, cache_v, norm_eps,
            kv_block=8)
        out = jax.block_until_ready(out)

        assert out.shape == (B, S, dim), out.shape
        assert bool(jnp.all(jnp.isfinite(out)))
        err = float(jnp.max(jnp.abs(out - ref)))
        cerr = max(float(jnp.max(jnp.abs(cache_k - ref_ck))),
                   float(jnp.max(jnp.abs(cache_v - ref_cv))))
        assert err < 2e-2, f"step {step}: max abs error vs reference: {err}"
        assert cerr < 2e-2, f"step {step}: max abs cache error: {cerr}"

    print("KERNEL_OK")
</pallas_src>

<mosaic_0001>
module attributes {stable_mosaic.version = 11 : i64} {
  func.func @kern(%arg0: memref<8x128xf32, #tpu.memory_space<vmem>>, %arg1: memref<8x128xf32, #tpu.memory_space<vmem>>) attributes {dimension_semantics = [], scalar_prefetch = 0 : i64, scratch_operands = 0 : i64, tpu.core_type = #tpu.core_type<tc>} {
    %c0 = arith.constant 0 : index
    %c0_0 = arith.constant 0 : index
    %0 = vector.load %arg0[%c0, %c0_0] : memref<8x128xf32, #tpu.memory_space<vmem>>, vector<8x128xf32>
    %c1_i32 = arith.constant 1 : i32
    %1 = tpu.dynamic_rotate %0 by %c1_i32 dim 1 : vector<8x128xf32>, i32 -> vector<8x128xf32>
    %c0_1 = arith.constant 0 : index
    %c0_2 = arith.constant 0 : index
    %2 = vector.load %arg1[%c0_1, %c0_2] : memref<8x128xf32, #tpu.memory_space<vmem>>, vector<8x128xf32>
    tpu.vector_store %arg1[%c0_1, %c0_2], %1 {strides = array<i32>} : memref<8x128xf32, #tpu.memory_space<vmem>>, vector<8x128xf32>,
    return
  }
}

</mosaic_0001>

<bundles_post_ra>
// kernel: tpu_custom_call.1
= control target key start
LH: loop header
LB: loop body
LE: loop exit
PB: predicated region body
PF: predicated region fallthrough
CT: control target
= control target key end

     0   :  { %6 = vsyncpa [#allocation3], 0  ;;  %s128_s0 = inlined_call_operand.hbm [shape: f32[8,128], index: 0, kind: input, shape index: {}]   ;;  %s129_s1 = inlined_call_operand.hbm [shape: f32[8,128], index: 1, kind: output, shape index: {}]  }
   0x1   :  { %7 = vsyncpa [#allocation4], 0  ;;  %s91_s6 = smov [#allocation2]   ;;  %s43_s10 = scalar_lea.hbm %s128_s0, 128 }
   0x2   :  { %s14_s7 = sshll.u32 %s91_s6, 4  ;;  %p44_p0 = scmp.ne.s32.totalorder %s128_s0, %s43_s10  ;;  %s15_s7 = int_to_ptr.vmem [resolvable:$true] %s14_s7 }
   0x3   :  { %p47_p1 = scmp.lt.u32.totalorder %s43_s10, %s128_s0 }
   0x5   :  { %p49_p2 = pnand %p47_p1, %p44_p0 }
   0x7   :  { %52 = shalt.err (!%p49_p2)
}
   0x8   :  { %s53_s15 = scalar_lea.vmem %s15_s7, 128  ;;  %p58_p4 = scmp.lt.s32.totalorder %s15_s7, %s15_s7 }
   0x9   :  { %p54_p3 = scmp.ne.s32.totalorder %s15_s7, %s53_s15  ;;  %p59_p5 = scmp.lt.s32.totalorder %s53_s15, %s53_s15 }
   0xb   :  { %p60_p6 = por %p59_p5, %p58_p4 }
   0xd   :  { %p61_p7 = pnand %p60_p6, %p54_p3 }
   0xf   :  { %64 = shalt.err (!%p61_p7)
}
  0x10   :  { %17 = dma.hbm_to_vmem [thread:$0]  %s128_s0, 128, %s15_s7, [#allocation3]  }
  0x11   :  { %87 = dma.done.wait [#allocation3], 128  }
  0x12   :  { %88 = vsyncadd [#allocation3], 4294967168  ;;  %v21_v0 = vld [vmem:[#allocation2] sm:$0xff]  ;;  %s92_s18 = smov 1   ;;  %s93_s19 = smov [#allocation5]  }
  0x13   :  { %22 = vrot.lane.b32.xlu0 %v21_v0, %s92_s18  ;;  %s31_s20 = sshll.u32 %s93_s19, 4  ;;  %s32_s20 = int_to_ptr.vmem [resolvable:$true] %s31_s20 }
  0x14   :  { %s65_s21 = scalar_lea.vmem %s32_s20, 128  ;;  %p70_p9 = scmp.lt.s32.totalorder %s32_s20, %s32_s20 }
  0x15   :  { %p66_p8 = scmp.ne.s32.totalorder %s32_s20, %s65_s21  ;;  %p71_p10 = scmp.lt.s32.totalorder %s65_s21, %s65_s21 }
  0x17   :  { %p72_p11 = por %p71_p10, %p70_p9 }
  0x19   :  { %p73_p12 = pnand %p72_p11, %p66_p8 }
  0x85   :  { %v23_v1 = vpop.permute.xlu0 %22 }
  0x86   :  { %24 = vst [vmem:[#allocation5] sm:$0xff] %v23_v1 }
  0x87   :  { %76 = shalt.err (!%p73_p12)
}
  0x88   :  { %s77_s0 = scalar_lea.hbm %s129_s1, 128 }
  0x89   :  { %p78_p13 = scmp.ne.s32.totalorder %s129_s1, %s77_s0  ;;  %p81_p0 = scmp.lt.u32.totalorder %s77_s0, %s129_s1 }
  0x8b   :  { %p83_p1 = pnand %p81_p0, %p78_p13 }
  0x8d   :  { %86 = shalt.err (!%p83_p1)
}
  0x8e   :  { %34 = dma.vmem_to_hbm [thread:$0]  %s32_s20, 128, %s129_s1, [#allocation4]  }
  0x8f   :  { %89 = dma.done.wait [#allocation4], 128  }
  0x90   :  { %90 = vsyncadd [#allocation4], 4294967168 }
  0x91   :  { %38 = vsyncpa [#allocation3], 1 }
  0x92   :  { %39 = vsyncpa [#allocation4], 1 }

</bundles_post_ra>
